<compile_context>
chip_gen: v7x
topology: tpu7x:2x2x1
jax: 0.10.0
libtpu: 0.0.40
codegen_flags: <defaults>
</compile_context>

<pallas_src>
import functools
import math

import jax
import jax.numpy as jnp
from jax import lax
from jax.experimental import pallas as pl
from jax.experimental.pallas import tpu as pltpu


# ----------------------------------------------------------------------------
# Packed-slab layouts (shared by host packer and kernel slicer).
# ----------------------------------------------------------------------------
def _r8(v):
    return ((v + 7) // 8) * 8


def _enc_layout(d_in, c, edge_dim):
    lay, r = {}, 0
    for name, rows in (("w_qkvs1", d_in), ("w_qkvs2", c),
                       ("we1_t", c), ("we2_t", c),
                       ("we1", edge_dim), ("we2", edge_dim)):
        lay[name] = r
        r += _r8(rows)
    lay["rows"], lay["cols"] = r, 4 * c
    return lay


def _dec_layout(c, hg, out_ch):
    lay, r = {}, 0
    for name, rows in (("w_gru", c), ("w1", hg), ("w2", 128),
                       ("w3", 64), ("w4", 32)):
        lay[name] = r
        r += _r8(rows)
    lay["rows"], lay["cols"] = r, max(3 * hg, 128)
    return lay


_BIAS_ROWS = ("b_qkvs1", "b_qkvs2", "b_gru", "b_hn", "b1", "b2", "b3", "b4")


# ----------------------------------------------------------------------------
# Fused kernel: encoder[0](TransformerConv)+ReLU -> encoder[2](TransformerConv)
#               -> GRU (1 timestep, h0=0) -> MLP(128,64,32)->out
# ----------------------------------------------------------------------------
def gnn_fused_kernel(x_ref, edge_ref, w_enc_ref, w_dec_ref, b_ref, o_ref,
                     *, hidden, hidden_gru, edge_dim, out_ch):
    n, d_in = x_ref.shape
    c, hg = hidden, hidden_gru
    elay = _enc_layout(d_in, c, edge_dim)
    dlay = _dec_layout(c, hg, out_ch)
    brow = {name: i for i, name in enumerate(_BIAS_ROWS)}

    x = x_ref[...]                                     # [N, Din]
    de = [edge_ref[e] for e in range(edge_dim)]        # edge_dim x [N, N]
    mask = edge_ref[edge_dim]                          # [N, N]  (1.0 iff j->i)
    neg_inf = jnp.where(mask > 0.0, 0.0, -1e30)        # keep score path in f32
    inv_sqrt_c = 1.0 / math.sqrt(c)

    def transformer_conv(h, d_h, w_key, wet_key, we_key, b_key, apply_relu):
        r0 = elay[w_key]
        w_qkvs = w_enc_ref[r0:r0 + d_h, 0:4 * c]        # [Dh, 4C] lane-dense
        b_qkvs = b_ref[brow[b_key]:brow[b_key] + 1, 0:4 * c]
        qkvs = jnp.dot(h, w_qkvs, preferred_element_type=jnp.float32) + b_qkvs
        q = qkvs[:, 0:c]
        k = qkvs[:, c:2 * c]
        v = qkvs[:, 2 * c:3 * c]
        skip = qkvs[:, 3 * c:4 * c]

        rt = elay[wet_key]
        we_t = w_enc_ref[rt:rt + c, 0:edge_dim]          # [C, Ed]
        qe = jnp.dot(q, we_t, preferred_element_type=jnp.float32)   # [N, Ed]

        # Scores: q_i.k_j (contract on shared dim -> no in-kernel transpose)
        # plus q_i.(e_ij @ We) factored through edge_dim as [N,N] FMAs.
        s = lax.dot_general(q, k, (((1,), (1,)), ((), ())),
                            preferred_element_type=jnp.float32)     # [N, N]
        for e in range(edge_dim):
            s = s + qe[:, e:e + 1] * de[e]
        s = s * inv_sqrt_c + neg_inf

        # Masked softmax over incoming edges (rows with no edges -> alpha = 0,
        # output degenerates to the skip connection; PyG would give NaN there).
        m = jnp.max(s, axis=1, keepdims=True)
        p = jnp.exp(s - m) * mask
        denom = jnp.maximum(jnp.sum(p, axis=1, keepdims=True), 1e-20)
        alpha = p * pl.reciprocal(denom, approx=True)

        out = jnp.dot(alpha, v, preferred_element_type=jnp.float32)  # sum a_ij v_j
        rw = elay[we_key]
        for e in range(edge_dim):
            ae = jnp.sum(alpha * de[e], axis=1, keepdims=True)       # [N, 1]
            out = out + ae * w_enc_ref[rw + e:rw + e + 1, 0:c]       # * We[e] row
        out = out + skip
        if apply_relu:
            out = jnp.maximum(out, 0.0)
        return out

    h = transformer_conv(x, d_in, "w_qkvs1", "we1_t", "we1", "b_qkvs1", True)
    h = transformer_conv(h, c, "w_qkvs2", "we2_t", "we2", "b_qkvs2", False)

    # Single-timestep PyTorch GRU with h_{t-1} = 0; gates r|z|n in one matmul.
    rg = dlay["w_gru"]
    gates = (jnp.dot(h, w_dec_ref[rg:rg + c, 0:3 * hg],
                     preferred_element_type=jnp.float32)
             + b_ref[brow["b_gru"]:brow["b_gru"] + 1, 0:3 * hg])     # [N, 3H]
    r = jax.nn.sigmoid(gates[:, 0:hg])
    z = jax.nn.sigmoid(gates[:, hg:2 * hg])
    ngate = jnp.tanh(gates[:, 2 * hg:3 * hg]
                     + r * b_ref[brow["b_hn"]:brow["b_hn"] + 1, 0:hg])
    g = (1.0 - z) * ngate                                            # + z*h0 (=0)

    # MLP: Linear(64,128)-ReLU-Linear(128,64)-ReLU-Linear(64,32)-ReLU-Linear(32,out)
    def dense(a, w_key, rows, cols, b_key, relu):
        r0 = dlay[w_key]
        y = (jnp.dot(a, w_dec_ref[r0:r0 + rows, 0:cols],
                     preferred_element_type=jnp.float32)
             + b_ref[brow[b_key]:brow[b_key] + 1, 0:cols])
        return jnp.maximum(y, 0.0) if relu else y

    h1 = dense(g, "w1", hg, 128, "b1", True)
    h2 = dense(h1, "w2", 128, 64, "b2", True)
    h3 = dense(h2, "w3", 64, 32, "b3", True)
    out = dense(h3, "w4", 32, out_ch, "b4", False)
    o_ref[...] = out.astype(o_ref.dtype)


# ----------------------------------------------------------------------------
# Wrapper: single pallas_call, 5 packed inputs, full-array VMEM blocks, no grid.
# ----------------------------------------------------------------------------
def gnn_model_forward(x, edge_slab, w_enc, w_dec, b_all, *,
                      hidden, hidden_gru, edge_dim, out_ch):
    n = x.shape[0]
    kernel = functools.partial(gnn_fused_kernel, hidden=hidden,
                               hidden_gru=hidden_gru, edge_dim=edge_dim,
                               out_ch=out_ch)
    vmem = pl.BlockSpec(memory_space=pltpu.MemorySpace.VMEM)
    return pl.pallas_call(
        kernel,
        out_shape=jax.ShapeDtypeStruct((n, out_ch), jnp.float32),
        in_specs=[vmem] * 5,
        out_specs=vmem,
    )(x, edge_slab, w_enc, w_dec, b_all)


# ----------------------------------------------------------------------------
# Deterministic parameter construction + host-side slab packing.
# ----------------------------------------------------------------------------
def _init(key, shape, scale=0.1):
    return scale * jax.random.normal(key, shape, dtype=jnp.float32)


def make_encoder_params(key, d_in, c, edge_dim):
    ks = jax.random.split(key, 9)
    wq, bq = _init(ks[0], (d_in, c)), _init(ks[1], (1, c))
    wk, bk = _init(ks[2], (d_in, c)), _init(ks[3], (1, c))
    wv, bv = _init(ks[4], (d_in, c)), _init(ks[5], (1, c))
    ws, bs = _init(ks[6], (d_in, c)), _init(ks[7], (1, c))
    we = _init(ks[8], (edge_dim, c))                 # PyG lin_edge has bias=False
    return dict(w_qkvs=jnp.concatenate([wq, wk, wv, ws], axis=1),   # [d_in, 4C]
                b_qkvs=jnp.concatenate([bq, bk, bv, bs], axis=1),   # [1, 4C]
                we=we)


def make_decoder_params(key, c, hg, out_ch):
    ks = jax.random.split(key, 17)
    wir, wiz, win = (_init(ks[0], (c, hg)), _init(ks[1], (c, hg)),
                     _init(ks[2], (c, hg)))
    # PyTorch GRU has separate input/hidden biases; with h0 = 0 only b_i*+b_h*
    # matter for r/z (n keeps b_hn separate because of the reset gate).
    b_ir, b_hr = _init(ks[3], (1, hg)), _init(ks[4], (1, hg))
    b_iz, b_hz = _init(ks[5], (1, hg)), _init(ks[6], (1, hg))
    b_in, b_hn = _init(ks[7], (1, hg)), _init(ks[8], (1, hg))
    return dict(
        w_gru=jnp.concatenate([wir, wiz, win], axis=1),                   # [C, 3H]
        b_gru=jnp.concatenate([b_ir + b_hr, b_iz + b_hz, b_in], axis=1),  # [1, 3H]
        b_hn=b_hn,
        w1=_init(ks[9], (hg, 128)), b1=_init(ks[10], (1, 128)),
        w2=_init(ks[11], (128, 64)), b2=_init(ks[12], (1, 64)),
        w3=_init(ks[13], (64, 32)), b3=_init(ks[14], (1, 32)),
        w4=_init(ks[15], (32, out_ch)), b4=_init(ks[16], (1, out_ch)),
    )


def pack_params(enc1, enc2, dec, *, d_in, c, edge_dim, hg, out_ch):
    def put(slab, row, arr):
        return slab.at[row:row + arr.shape[0], 0:arr.shape[1]].set(arr)

    elay = _enc_layout(d_in, c, edge_dim)
    w_enc = jnp.zeros((elay["rows"], elay["cols"]), jnp.float32)
    w_enc = put(w_enc, elay["w_qkvs1"], enc1["w_qkvs"])
    w_enc = put(w_enc, elay["w_qkvs2"], enc2["w_qkvs"])
    w_enc = put(w_enc, elay["we1_t"], enc1["we"].T)
    w_enc = put(w_enc, elay["we2_t"], enc2["we"].T)
    w_enc = put(w_enc, elay["we1"], enc1["we"])
    w_enc = put(w_enc, elay["we2"], enc2["we"])

    dlay = _dec_layout(c, hg, out_ch)
    w_dec = jnp.zeros((dlay["rows"], dlay["cols"]), jnp.float32)
    w_dec = put(w_dec, dlay["w_gru"], dec["w_gru"])
    w_dec = put(w_dec, dlay["w1"], dec["w1"])
    w_dec = put(w_dec, dlay["w2"], dec["w2"])
    w_dec = put(w_dec, dlay["w3"], dec["w3"])
    w_dec = put(w_dec, dlay["w4"], dec["w4"])

    bias_cols = max(4 * c, 3 * hg, 128, out_ch)
    b_all = jnp.zeros((len(_BIAS_ROWS), bias_cols), jnp.float32)
    bias_src = dict(b_qkvs1=enc1["b_qkvs"], b_qkvs2=enc2["b_qkvs"],
                    b_gru=dec["b_gru"], b_hn=dec["b_hn"],
                    b1=dec["b1"], b2=dec["b2"], b3=dec["b3"], b4=dec["b4"])
    for i, name in enumerate(_BIAS_ROWS):
        arr = bias_src[name]
        b_all = b_all.at[i:i + 1, 0:arr.shape[1]].set(arr)
    return w_enc, w_dec, b_all


if __name__ == "__main__":
    N = 8              # number of graph nodes
    INPUT_SIZE = 16    # node feature dim
    HIDDEN = 32        # hidden_channels
    EDGE_DIM = 4       # edge_attr feature dim
    OUT_CH = 8         # out_channels
    HIDDEN_GRU = 64

    key = jax.random.PRNGKey(0)
    k_x, k_e, k_enc1, k_enc2, k_dec = jax.random.split(key, 5)

    # Node features [N, F]
    x = jax.random.normal(k_x, (N, INPUT_SIZE), dtype=jnp.float32)

    # Ring-ish graph: each node i receives edges from (i-1)%N and (i+2)%N.
    src, dst = [], []
    for i in range(N):
        src += [(i - 1) % N, (i + 2) % N]
        dst += [i, i]
    src = jnp.array(src, dtype=jnp.int32)
    dst = jnp.array(dst, dtype=jnp.int32)
    E = int(src.shape[0])
    edge_attr = jax.random.normal(k_e, (E, EDGE_DIM), dtype=jnp.float32)

    # Densify host-side: adjacency mask[target, source]; dense edge attrs in
    # channel-major [edge_dim, N, N] layout, packed with the mask -> ONE slab.
    mask = jnp.zeros((N, N), dtype=jnp.float32).at[dst, src].set(1.0)
    de_t = jnp.zeros((EDGE_DIM, N, N), dtype=jnp.float32).at[:, dst, src].set(edge_attr.T)
    edge_slab = jnp.concatenate([de_t, mask[None]], axis=0)        # [Ed+1, N, N]

    enc1 = make_encoder_params(k_enc1, INPUT_SIZE, HIDDEN, EDGE_DIM)
    enc2 = make_encoder_params(k_enc2, HIDDEN, HIDDEN, EDGE_DIM)
    dec = make_decoder_params(k_dec, HIDDEN, HIDDEN_GRU, OUT_CH)
    w_enc, w_dec, b_all = pack_params(enc1, enc2, dec, d_in=INPUT_SIZE, c=HIDDEN,
                                      edge_dim=EDGE_DIM, hg=HIDDEN_GRU, out_ch=OUT_CH)

    out = gnn_model_forward(x, edge_slab, w_enc, w_dec, b_all,
                            hidden=HIDDEN, hidden_gru=HIDDEN_GRU,
                            edge_dim=EDGE_DIM, out_ch=OUT_CH)
    out = jax.block_until_ready(out)
    assert out.shape == (N, OUT_CH) and out.dtype == jnp.float32
    assert bool(jnp.all(jnp.isfinite(out)))
    print("KERNEL_OK")
</pallas_src>

<mosaic_0001>
module attributes {stable_mosaic.version = 11 : i64} {
  func.func @gnn_fused_kernel(%arg0: memref<8x16xf32, #tpu.memory_space<vmem>>, %arg1: memref<5x8x8xf32, #tpu.memory_space<vmem>>, %arg2: memref<128x128xf32, #tpu.memory_space<vmem>>, %arg3: memref<320x192xf32, #tpu.memory_space<vmem>>, %arg4: memref<8x192xf32, #tpu.memory_space<vmem>>, %arg5: memref<8x8xf32, #tpu.memory_space<vmem>>) attributes {dimension_semantics = [], scalar_prefetch = 0 : i64, scratch_operands = 0 : i64, tpu.core_type = #tpu.core_type<tc>} {
    %c0 = arith.constant 0 : index
    %c0_0 = arith.constant 0 : index
    %0 = vector.load %arg0[%c0, %c0_0] : memref<8x16xf32, #tpu.memory_space<vmem>>, vector<8x16xf32>
    %c0_1 = arith.constant 0 : index
    %c0_2 = arith.constant 0 : index
    %c0_3 = arith.constant 0 : index
    %1 = vector.load %arg1[%c0_1, %c0_2, %c0_3] : memref<5x8x8xf32, #tpu.memory_space<vmem>>, vector<1x8x8xf32>
    %2 = vector.shape_cast %1 : vector<1x8x8xf32> to vector<8x8xf32>
    %c1 = arith.constant 1 : index
    %c0_4 = arith.constant 0 : index
    %c0_5 = arith.constant 0 : index
    %3 = vector.load %arg1[%c1, %c0_4, %c0_5] : memref<5x8x8xf32, #tpu.memory_space<vmem>>, vector<1x8x8xf32>
    %4 = vector.shape_cast %3 : vector<1x8x8xf32> to vector<8x8xf32>
    %c2 = arith.constant 2 : index
    %c0_6 = arith.constant 0 : index
    %c0_7 = arith.constant 0 : index
    %5 = vector.load %arg1[%c2, %c0_6, %c0_7] : memref<5x8x8xf32, #tpu.memory_space<vmem>>, vector<1x8x8xf32>
    %6 = vector.shape_cast %5 : vector<1x8x8xf32> to vector<8x8xf32>
    %c3 = arith.constant 3 : index
    %c0_8 = arith.constant 0 : index
    %c0_9 = arith.constant 0 : index
    %7 = vector.load %arg1[%c3, %c0_8, %c0_9] : memref<5x8x8xf32, #tpu.memory_space<vmem>>, vector<1x8x8xf32>
    %8 = vector.shape_cast %7 : vector<1x8x8xf32> to vector<8x8xf32>
    %c4 = arith.constant 4 : index
    %c0_10 = arith.constant 0 : index
    %c0_11 = arith.constant 0 : index
    %9 = vector.load %arg1[%c4, %c0_10, %c0_11] : memref<5x8x8xf32, #tpu.memory_space<vmem>>, vector<1x8x8xf32>
    %10 = vector.shape_cast %9 : vector<1x8x8xf32> to vector<8x8xf32>
    %cst = arith.constant 0.000000e+00 : f32
    %11 = vector.broadcast %cst : f32 to vector<8x8xf32>
    %12 = arith.cmpf ogt, %10, %11 : vector<8x8xf32>
    %cst_12 = arith.constant 0.000000e+00 : f32
    %cst_13 = arith.constant -1.000000e+30 : f32
    %13 = vector.broadcast %cst_12 : f32 to vector<8x8xf32>
    %14 = vector.broadcast %cst_13 : f32 to vector<8x8xf32>
    %15 = arith.select %12, %13, %14 : vector<8x8xi1>, vector<8x8xf32>
    %c0_14 = arith.constant 0 : index
    %c0_15 = arith.constant 0 : index
    %16 = vector.load %arg2[%c0_14, %c0_15] : memref<128x128xf32, #tpu.memory_space<vmem>>, vector<16x128xf32>
    %c0_16 = arith.constant 0 : index
    %c0_17 = arith.constant 0 : index
    %17 = vector.load %arg4[%c0_16, %c0_17] : memref<8x192xf32, #tpu.memory_space<vmem>>, vector<1x128xf32>
    %cst_18 = arith.constant dense<0.000000e+00> : vector<8x128xf32>
    %18 = tpu.matmul %0, %16, %cst_18 {dimension_numbers = #tpu.dot_dimension_numbers<[1], [0], [0], [1], [0, 0, 1, 1], [], []>} : vector<8x16xf32>, vector<16x128xf32>, vector<8x128xf32> -> vector<8x128xf32>
    %19 = vector.broadcast %17 : vector<1x128xf32> to vector<8x128xf32>
    %20 = arith.addf %18, %19 : vector<8x128xf32>
    %21 = vector.extract_strided_slice %20 {offsets = [0, 0], sizes = [8, 32], strides = [1, 1]} : vector<8x128xf32> to vector<8x32xf32>
    %22 = vector.extract_strided_slice %20 {offsets = [0, 32], sizes = [8, 32], strides = [1, 1]} : vector<8x128xf32> to vector<8x32xf32>
    %23 = vector.extract_strided_slice %20 {offsets = [0, 64], sizes = [8, 32], strides = [1, 1]} : vector<8x128xf32> to vector<8x32xf32>
    %24 = vector.extract_strided_slice %20 {offsets = [0, 96], sizes = [8, 32], strides = [1, 1]} : vector<8x128xf32> to vector<8x32xf32>
    %c48 = arith.constant 48 : index
    %c0_19 = arith.constant 0 : index
    %25 = vector.load %arg2[%c48, %c0_19] : memref<128x128xf32, #tpu.memory_space<vmem>>, vector<32x4xf32>
    %cst_20 = arith.constant dense<0.000000e+00> : vector<8x4xf32>
    %26 = tpu.matmul %21, %25, %cst_20 {dimension_numbers = #tpu.dot_dimension_numbers<[1], [0], [0], [1], [0, 0, 1, 1], [], []>} : vector<8x32xf32>, vector<32x4xf32>, vector<8x4xf32> -> vector<8x4xf32>
    %cst_21 = arith.constant dense<0.000000e+00> : vector<8x8xf32>
    %27 = tpu.matmul %21, %22, %cst_21 {dimension_numbers = #tpu.dot_dimension_numbers<[1], [1], [0], [0], [0, 0, 1, 0], [], []>} : vector<8x32xf32>, vector<8x32xf32>, vector<8x8xf32> -> vector<8x8xf32>
    %28 = vector.extract_strided_slice %26 {offsets = [0, 0], sizes = [8, 1], strides = [1, 1]} : vector<8x4xf32> to vector<8x1xf32>
    %29 = vector.broadcast %28 : vector<8x1xf32> to vector<8x8xf32>
    %30 = arith.mulf %29, %2 : vector<8x8xf32>
    %31 = arith.addf %27, %30 : vector<8x8xf32>
    %32 = vector.extract_strided_slice %26 {offsets = [0, 1], sizes = [8, 1], strides = [1, 1]} : vector<8x4xf32> to vector<8x1xf32>
    %33 = vector.broadcast %32 : vector<8x1xf32> to vector<8x8xf32>
    %34 = arith.mulf %33, %4 : vector<8x8xf32>
    %35 = arith.addf %31, %34 : vector<8x8xf32>
    %36 = vector.extract_strided_slice %26 {offsets = [0, 2], sizes = [8, 1], strides = [1, 1]} : vector<8x4xf32> to vector<8x1xf32>
    %37 = vector.broadcast %36 : vector<8x1xf32> to vector<8x8xf32>
    %38 = arith.mulf %37, %6 : vector<8x8xf32>
    %39 = arith.addf %35, %38 : vector<8x8xf32>
    %40 = vector.extract_strided_slice %26 {offsets = [0, 3], sizes = [8, 1], strides = [1, 1]} : vector<8x4xf32> to vector<8x1xf32>
    %41 = vector.broadcast %40 : vector<8x1xf32> to vector<8x8xf32>
    %42 = arith.mulf %41, %8 : vector<8x8xf32>
    %43 = arith.addf %39, %42 : vector<8x8xf32>
    %cst_22 = arith.constant 0.176776692 : f32
    %44 = vector.broadcast %cst_22 : f32 to vector<8x8xf32>
    %45 = arith.mulf %43, %44 : vector<8x8xf32>
    %46 = arith.addf %45, %15 : vector<8x8xf32>
    %cst_23 = arith.constant dense<0xFF800000> : vector<8xf32>
    %47 = vector.multi_reduction <maximumf>, %46, %cst_23 [1] : vector<8x8xf32> to vector<8xf32>
    %48 = vector.shape_cast %47 : vector<8xf32> to vector<8x1xf32>
    %49 = vector.broadcast %48 : vector<8x1xf32> to vector<8x8xf32>
    %50 = arith.subf %46, %49 : vector<8x8xf32>
    %51 = math.exp %50 : vector<8x8xf32>
    %52 = arith.mulf %51, %10 : vector<8x8xf32>
    %cst_24 = arith.constant dense<0.000000e+00> : vector<8xf32>
    %53 = vector.multi_reduction <add>, %52, %cst_24 [1] : vector<8x8xf32> to vector<8xf32>
    %54 = vector.shape_cast %53 : vector<8xf32> to vector<8x1xf32>
    %cst_25 = arith.constant 9.99999968E-21 : f32
    %55 = vector.broadcast %cst_25 : f32 to vector<8x1xf32>
    %56 = arith.maximumf %54, %55 : vector<8x1xf32>
    %57 = tpu.reciprocal %56 {approx = true} : vector<8x1xf32> -> vector<8x1xf32>
    %58 = vector.broadcast %57 : vector<8x1xf32> to vector<8x8xf32>
    %59 = arith.mulf %52, %58 : vector<8x8xf32>
    %cst_26 = arith.constant dense<0.000000e+00> : vector<8x32xf32>
    %60 = tpu.matmul %59, %23, %cst_26 {dimension_numbers = #tpu.dot_dimension_numbers<[1], [0], [0], [1], [0, 0, 1, 1], [], []>} : vector<8x8xf32>, vector<8x32xf32>, vector<8x32xf32> -> vector<8x32xf32>
    %61 = arith.mulf %59, %2 : vector<8x8xf32>
    %cst_27 = arith.constant dense<0.000000e+00> : vector<8xf32>
    %62 = vector.multi_reduction <add>, %61, %cst_27 [1] : vector<8x8xf32> to vector<8xf32>
    %63 = vector.shape_cast %62 : vector<8xf32> to vector<8x1xf32>
    %c112 = arith.constant 112 : index
    %c0_28 = arith.constant 0 : index
    %64 = vector.load %arg2[%c112, %c0_28] : memref<128x128xf32, #tpu.memory_space<vmem>>, vector<1x32xf32>
    %65 = vector.broadcast %63 : vector<8x1xf32> to vector<8x32xf32>
    %66 = vector.broadcast %64 : vector<1x32xf32> to vector<8x32xf32>
    %67 = arith.mulf %65, %66 : vector<8x32xf32>
    %68 = arith.addf %60, %67 : vector<8x32xf32>
    %69 = arith.mulf %59, %4 : vector<8x8xf32>
    %cst_29 = arith.constant dense<0.000000e+00> : vector<8xf32>
    %70 = vector.multi_reduction <add>, %69, %cst_29 [1] : vector<8x8xf32> to vector<8xf32>
    %71 = vector.shape_cast %70 : vector<8xf32> to vector<8x1xf32>
    %c113 = arith.constant 113 : index
    %c0_30 = arith.constant 0 : index
    %72 = vector.load %arg2[%c113, %c0_30] : memref<128x128xf32, #tpu.memory_space<vmem>>, vector<1x32xf32>
    %73 = vector.broadcast %71 : vector<8x1xf32> to vector<8x32xf32>
    %74 = vector.broadcast %72 : vector<1x32xf32> to vector<8x32xf32>
    %75 = arith.mulf %73, %74 : vector<8x32xf32>
    %76 = arith.addf %68, %75 : vector<8x32xf32>
    %77 = arith.mulf %59, %6 : vector<8x8xf32>
    %cst_31 = arith.constant dense<0.000000e+00> : vector<8xf32>
    %78 = vector.multi_reduction <add>, %77, %cst_31 [1] : vector<8x8xf32> to vector<8xf32>
    %79 = vector.shape_cast %78 : vector<8xf32> to vector<8x1xf32>
    %c114 = arith.constant 114 : index
    %c0_32 = arith.constant 0 : index
    %80 = vector.load %arg2[%c114, %c0_32] : memref<128x128xf32, #tpu.memory_space<vmem>>, vector<1x32xf32>
    %81 = vector.broadcast %79 : vector<8x1xf32> to vector<8x32xf32>
    %82 = vector.broadcast %80 : vector<1x32xf32> to vector<8x32xf32>
    %83 = arith.mulf %81, %82 : vector<8x32xf32>
    %84 = arith.addf %76, %83 : vector<8x32xf32>
    %85 = arith.mulf %59, %8 : vector<8x8xf32>
    %cst_33 = arith.constant dense<0.000000e+00> : vector<8xf32>
    %86 = vector.multi_reduction <add>, %85, %cst_33 [1] : vector<8x8xf32> to vector<8xf32>
    %87 = vector.shape_cast %86 : vector<8xf32> to vector<8x1xf32>
    %c115 = arith.constant 115 : index
    %c0_34 = arith.constant 0 : index
    %88 = vector.load %arg2[%c115, %c0_34] : memref<128x128xf32, #tpu.memory_space<vmem>>, vector<1x32xf32>
    %89 = vector.broadcast %87 : vector<8x1xf32> to vector<8x32xf32>
    %90 = vector.broadcast %88 : vector<1x32xf32> to vector<8x32xf32>
    %91 = arith.mulf %89, %90 : vector<8x32xf32>
    %92 = arith.addf %84, %91 : vector<8x32xf32>
    %93 = arith.addf %92, %24 : vector<8x32xf32>
    %cst_35 = arith.constant 0.000000e+00 : f32
    %94 = vector.broadcast %cst_35 : f32 to vector<8x32xf32>
    %95 = arith.maximumf %93, %94 : vector<8x32xf32>
    %c16 = arith.constant 16 : index
    %c0_36 = arith.constant 0 : index
    %96 = vector.load %arg2[%c16, %c0_36] : memref<128x128xf32, #tpu.memory_space<vmem>>, vector<32x128xf32>
    %c1_37 = arith.constant 1 : index
    %c0_38 = arith.constant 0 : index
    %97 = vector.load %arg4[%c1_37, %c0_38] : memref<8x192xf32, #tpu.memory_space<vmem>>, vector<1x128xf32>
    %cst_39 = arith.constant dense<0.000000e+00> : vector<8x128xf32>
    %98 = tpu.matmul %95, %96, %cst_39 {dimension_numbers = #tpu.dot_dimension_numbers<[1], [0], [0], [1], [0, 0, 1, 1], [], []>} : vector<8x32xf32>, vector<32x128xf32>, vector<8x128xf32> -> vector<8x128xf32>
    %99 = vector.broadcast %97 : vector<1x128xf32> to vector<8x128xf32>
    %100 = arith.addf %98, %99 : vector<8x128xf32>
    %101 = vector.extract_strided_slice %100 {offsets = [0, 0], sizes = [8, 32], strides = [1, 1]} : vector<8x128xf32> to vector<8x32xf32>
    %102 = vector.extract_strided_slice %100 {offsets = [0, 32], sizes = [8, 32], strides = [1, 1]} : vector<8x128xf32> to vector<8x32xf32>
    %103 = vector.extract_strided_slice %100 {offsets = [0, 64], sizes = [8, 32], strides = [1, 1]} : vector<8x128xf32> to vector<8x32xf32>
    %104 = vector.extract_strided_slice %100 {offsets = [0, 96], sizes = [8, 32], strides = [1, 1]} : vector<8x128xf32> to vector<8x32xf32>
    %c80 = arith.constant 80 : index
    %c0_40 = arith.constant 0 : index
    %105 = vector.load %arg2[%c80, %c0_40] : memref<128x128xf32, #tpu.memory_space<vmem>>, vector<32x4xf32>
    %cst_41 = arith.constant dense<0.000000e+00> : vector<8x4xf32>
    %106 = tpu.matmul %101, %105, %cst_41 {dimension_numbers = #tpu.dot_dimension_numbers<[1], [0], [0], [1], [0, 0, 1, 1], [], []>} : vector<8x32xf32>, vector<32x4xf32>, vector<8x4xf32> -> vector<8x4xf32>
    %cst_42 = arith.constant dense<0.000000e+00> : vector<8x8xf32>
    %107 = tpu.matmul %101, %102, %cst_42 {dimension_numbers = #tpu.dot_dimension_numbers<[1], [1], [0], [0], [0, 0, 1, 0], [], []>} : vector<8x32xf32>, vector<8x32xf32>, vector<8x8xf32> -> vector<8x8xf32>
    %108 = vector.extract_strided_slice %106 {offsets = [0, 0], sizes = [8, 1], strides = [1, 1]} : vector<8x4xf32> to vector<8x1xf32>
    %109 = vector.broadcast %108 : vector<8x1xf32> to vector<8x8xf32>
    %110 = arith.mulf %109, %2 : vector<8x8xf32>
    %111 = arith.addf %107, %110 : vector<8x8xf32>
    %112 = vector.extract_strided_slice %106 {offsets = [0, 1], sizes = [8, 1], strides = [1, 1]} : vector<8x4xf32> to vector<8x1xf32>
    %113 = vector.broadcast %112 : vector<8x1xf32> to vector<8x8xf32>
    %114 = arith.mulf %113, %4 : vector<8x8xf32>
    %115 = arith.addf %111, %114 : vector<8x8xf32>
    %116 = vector.extract_strided_slice %106 {offsets = [0, 2], sizes = [8, 1], strides = [1, 1]} : vector<8x4xf32> to vector<8x1xf32>
    %117 = vector.broadcast %116 : vector<8x1xf32> to vector<8x8xf32>
    %118 = arith.mulf %117, %6 : vector<8x8xf32>
    %119 = arith.addf %115, %118 : vector<8x8xf32>
    %120 = vector.extract_strided_slice %106 {offsets = [0, 3], sizes = [8, 1], strides = [1, 1]} : vector<8x4xf32> to vector<8x1xf32>
    %121 = vector.broadcast %120 : vector<8x1xf32> to vector<8x8xf32>
    %122 = arith.mulf %121, %8 : vector<8x8xf32>
    %123 = arith.addf %119, %122 : vector<8x8xf32>
    %cst_43 = arith.constant 0.176776692 : f32
    %124 = vector.broadcast %cst_43 : f32 to vector<8x8xf32>
    %125 = arith.mulf %123, %124 : vector<8x8xf32>
    %126 = arith.addf %125, %15 : vector<8x8xf32>
    %cst_44 = arith.constant dense<0xFF800000> : vector<8xf32>
    %127 = vector.multi_reduction <maximumf>, %126, %cst_44 [1] : vector<8x8xf32> to vector<8xf32>
    %128 = vector.shape_cast %127 : vector<8xf32> to vector<8x1xf32>
    %129 = vector.broadcast %128 : vector<8x1xf32> to vector<8x8xf32>
    %130 = arith.subf %126, %129 : vector<8x8xf32>
    %131 = math.exp %130 : vector<8x8xf32>
    %132 = arith.mulf %131, %10 : vector<8x8xf32>
    %cst_45 = arith.constant dense<0.000000e+00> : vector<8xf32>
    %133 = vector.multi_reduction <add>, %132, %cst_45 [1] : vector<8x8xf32> to vector<8xf32>
    %134 = vector.shape_cast %133 : vector<8xf32> to vector<8x1xf32>
    %cst_46 = arith.constant 9.99999968E-21 : f32
    %135 = vector.broadcast %cst_46 : f32 to vector<8x1xf32>
    %136 = arith.maximumf %134, %135 : vector<8x1xf32>
    %137 = tpu.reciprocal %136 {approx = true} : vector<8x1xf32> -> vector<8x1xf32>
    %138 = vector.broadcast %137 : vector<8x1xf32> to vector<8x8xf32>
    %139 = arith.mulf %132, %138 : vector<8x8xf32>
    %cst_47 = arith.constant dense<0.000000e+00> : vector<8x32xf32>
    %140 = tpu.matmul %139, %103, %cst_47 {dimension_numbers = #tpu.dot_dimension_numbers<[1], [0], [0], [1], [0, 0, 1, 1], [], []>} : vector<8x8xf32>, vector<8x32xf32>, vector<8x32xf32> -> vector<8x32xf32>
    %141 = arith.mulf %139, %2 : vector<8x8xf32>
    %cst_48 = arith.constant dense<0.000000e+00> : vector<8xf32>
    %142 = vector.multi_reduction <add>, %141, %cst_48 [1] : vector<8x8xf32> to vector<8xf32>
    %143 = vector.shape_cast %142 : vector<8xf32> to vector<8x1xf32>
    %c120 = arith.constant 120 : index
    %c0_49 = arith.constant 0 : index
    %144 = vector.load %arg2[%c120, %c0_49] : memref<128x128xf32, #tpu.memory_space<vmem>>, vector<1x32xf32>
    %145 = vector.broadcast %143 : vector<8x1xf32> to vector<8x32xf32>
    %146 = vector.broadcast %144 : vector<1x32xf32> to vector<8x32xf32>
    %147 = arith.mulf %145, %146 : vector<8x32xf32>
    %148 = arith.addf %140, %147 : vector<8x32xf32>
    %149 = arith.mulf %139, %4 : vector<8x8xf32>
    %cst_50 = arith.constant dense<0.000000e+00> : vector<8xf32>
    %150 = vector.multi_reduction <add>, %149, %cst_50 [1] : vector<8x8xf32> to vector<8xf32>
    %151 = vector.shape_cast %150 : vector<8xf32> to vector<8x1xf32>
    %c121 = arith.constant 121 : index
    %c0_51 = arith.constant 0 : index
    %152 = vector.load %arg2[%c121, %c0_51] : memref<128x128xf32, #tpu.memory_space<vmem>>, vector<1x32xf32>
    %153 = vector.broadcast %151 : vector<8x1xf32> to vector<8x32xf32>
    %154 = vector.broadcast %152 : vector<1x32xf32> to vector<8x32xf32>
    %155 = arith.mulf %153, %154 : vector<8x32xf32>
    %156 = arith.addf %148, %155 : vector<8x32xf32>
    %157 = arith.mulf %139, %6 : vector<8x8xf32>
    %cst_52 = arith.constant dense<0.000000e+00> : vector<8xf32>
    %158 = vector.multi_reduction <add>, %157, %cst_52 [1] : vector<8x8xf32> to vector<8xf32>
    %159 = vector.shape_cast %158 : vector<8xf32> to vector<8x1xf32>
    %c122 = arith.constant 122 : index
    %c0_53 = arith.constant 0 : index
    %160 = vector.load %arg2[%c122, %c0_53] : memref<128x128xf32, #tpu.memory_space<vmem>>, vector<1x32xf32>
    %161 = vector.broadcast %159 : vector<8x1xf32> to vector<8x32xf32>
    %162 = vector.broadcast %160 : vector<1x32xf32> to vector<8x32xf32>
    %163 = arith.mulf %161, %162 : vector<8x32xf32>
    %164 = arith.addf %156, %163 : vector<8x32xf32>
    %165 = arith.mulf %139, %8 : vector<8x8xf32>
    %cst_54 = arith.constant dense<0.000000e+00> : vector<8xf32>
    %166 = vector.multi_reduction <add>, %165, %cst_54 [1] : vector<8x8xf32> to vector<8xf32>
    %167 = vector.shape_cast %166 : vector<8xf32> to vector<8x1xf32>
    %c123 = arith.constant 123 : index
    %c0_55 = arith.constant 0 : index
    %168 = vector.load %arg2[%c123, %c0_55] : memref<128x128xf32, #tpu.memory_space<vmem>>, vector<1x32xf32>
    %169 = vector.broadcast %167 : vector<8x1xf32> to vector<8x32xf32>
    %170 = vector.broadcast %168 : vector<1x32xf32> to vector<8x32xf32>
    %171 = arith.mulf %169, %170 : vector<8x32xf32>
    %172 = arith.addf %164, %171 : vector<8x32xf32>
    %173 = arith.addf %172, %104 : vector<8x32xf32>
    %c0_56 = arith.constant 0 : index
    %c0_57 = arith.constant 0 : index
    %174 = vector.load %arg3[%c0_56, %c0_57] : memref<320x192xf32, #tpu.memory_space<vmem>>, vector<32x192xf32>
    %cst_58 = arith.constant dense<0.000000e+00> : vector<8x192xf32>
    %175 = tpu.matmul %173, %174, %cst_58 {dimension_numbers = #tpu.dot_dimension_numbers<[1], [0], [0], [1], [0, 0, 1, 1], [], []>} : vector<8x32xf32>, vector<32x192xf32>, vector<8x192xf32> -> vector<8x192xf32>
    %c2_59 = arith.constant 2 : index
    %c0_60 = arith.constant 0 : index
    %176 = vector.load %arg4[%c2_59, %c0_60] : memref<8x192xf32, #tpu.memory_space<vmem>>, vector<1x192xf32>
    %177 = vector.broadcast %176 : vector<1x192xf32> to vector<8x192xf32>
    %178 = arith.addf %175, %177 : vector<8x192xf32>
    %179 = vector.extract_strided_slice %178 {offsets = [0, 0], sizes = [8, 64], strides = [1, 1]} : vector<8x192xf32> to vector<8x64xf32>
    %180 = arith.negf %179 : vector<8x64xf32>
    %181 = math.exp %180 : vector<8x64xf32>
    %cst_61 = arith.constant 1.000000e+00 : f32
    %182 = vector.broadcast %cst_61 : f32 to vector<8x64xf32>
    %183 = arith.addf %182, %181 : vector<8x64xf32>
    %184 = arith.divf %182, %183 : vector<8x64xf32>
    %185 = vector.extract_strided_slice %178 {offsets = [0, 64], sizes = [8, 64], strides = [1, 1]} : vector<8x192xf32> to vector<8x64xf32>
    %186 = arith.negf %185 : vector<8x64xf32>
    %187 = math.exp %186 : vector<8x64xf32>
    %cst_62 = arith.constant 1.000000e+00 : f32
    %188 = vector.broadcast %cst_62 : f32 to vector<8x64xf32>
    %189 = arith.addf %188, %187 : vector<8x64xf32>
    %190 = arith.divf %188, %189 : vector<8x64xf32>
    %191 = vector.extract_strided_slice %178 {offsets = [0, 128], sizes = [8, 64], strides = [1, 1]} : vector<8x192xf32> to vector<8x64xf32>
    %c3_63 = arith.constant 3 : index
    %c0_64 = arith.constant 0 : index
    %192 = vector.load %arg4[%c3_63, %c0_64] : memref<8x192xf32, #tpu.memory_space<vmem>>, vector<1x64xf32>
    %193 = vector.broadcast %192 : vector<1x64xf32> to vector<8x64xf32>
    %194 = arith.mulf %184, %193 : vector<8x64xf32>
    %195 = arith.addf %191, %194 : vector<8x64xf32>
    %196 = math.tanh %195 : vector<8x64xf32>
    %cst_65 = arith.constant 1.000000e+00 : f32
    %197 = vector.broadcast %cst_65 : f32 to vector<8x64xf32>
    %198 = arith.subf %197, %190 : vector<8x64xf32>
    %199 = arith.mulf %198, %196 : vector<8x64xf32>
    %c32 = arith.constant 32 : index
    %c0_66 = arith.constant 0 : index
    %200 = vector.load %arg3[%c32, %c0_66] : memref<320x192xf32, #tpu.memory_space<vmem>>, vector<64x128xf32>
    %cst_67 = arith.constant dense<0.000000e+00> : vector<8x128xf32>
    %201 = tpu.matmul %199, %200, %cst_67 {dimension_numbers = #tpu.dot_dimension_numbers<[1], [0], [0], [1], [0, 0, 1, 1], [], []>} : vector<8x64xf32>, vector<64x128xf32>, vector<8x128xf32> -> vector<8x128xf32>
    %c4_68 = arith.constant 4 : index
    %c0_69 = arith.constant 0 : index
    %202 = vector.load %arg4[%c4_68, %c0_69] : memref<8x192xf32, #tpu.memory_space<vmem>>, vector<1x128xf32>
    %203 = vector.broadcast %202 : vector<1x128xf32> to vector<8x128xf32>
    %204 = arith.addf %201, %203 : vector<8x128xf32>
    %cst_70 = arith.constant 0.000000e+00 : f32
    %205 = vector.broadcast %cst_70 : f32 to vector<8x128xf32>
    %206 = arith.maximumf %204, %205 : vector<8x128xf32>
    %c96 = arith.constant 96 : index
    %c0_71 = arith.constant 0 : index
    %207 = vector.load %arg3[%c96, %c0_71] : memref<320x192xf32, #tpu.memory_space<vmem>>, vector<128x64xf32>
    %cst_72 = arith.constant dense<0.000000e+00> : vector<8x64xf32>
    %208 = tpu.matmul %206, %207, %cst_72 {dimension_numbers = #tpu.dot_dimension_numbers<[1], [0], [0], [1], [0, 0, 1, 1], [], []>} : vector<8x128xf32>, vector<128x64xf32>, vector<8x64xf32> -> vector<8x64xf32>
    %c5 = arith.constant 5 : index
    %c0_73 = arith.constant 0 : index
    %209 = vector.load %arg4[%c5, %c0_73] : memref<8x192xf32, #tpu.memory_space<vmem>>, vector<1x64xf32>
    %210 = vector.broadcast %209 : vector<1x64xf32> to vector<8x64xf32>
    %211 = arith.addf %208, %210 : vector<8x64xf32>
    %cst_74 = arith.constant 0.000000e+00 : f32
    %212 = vector.broadcast %cst_74 : f32 to vector<8x64xf32>
    %213 = arith.maximumf %211, %212 : vector<8x64xf32>
    %c224 = arith.constant 224 : index
    %c0_75 = arith.constant 0 : index
    %214 = vector.load %arg3[%c224, %c0_75] : memref<320x192xf32, #tpu.memory_space<vmem>>, vector<64x32xf32>
    %cst_76 = arith.constant dense<0.000000e+00> : vector<8x32xf32>
    %215 = tpu.matmul %213, %214, %cst_76 {dimension_numbers = #tpu.dot_dimension_numbers<[1], [0], [0], [1], [0, 0, 1, 1], [], []>} : vector<8x64xf32>, vector<64x32xf32>, vector<8x32xf32> -> vector<8x32xf32>
    %c6 = arith.constant 6 : index
    %c0_77 = arith.constant 0 : index
    %216 = vector.load %arg4[%c6, %c0_77] : memref<8x192xf32, #tpu.memory_space<vmem>>, vector<1x32xf32>
    %217 = vector.broadcast %216 : vector<1x32xf32> to vector<8x32xf32>
    %218 = arith.addf %215, %217 : vector<8x32xf32>
    %cst_78 = arith.constant 0.000000e+00 : f32
    %219 = vector.broadcast %cst_78 : f32 to vector<8x32xf32>
    %220 = arith.maximumf %218, %219 : vector<8x32xf32>
    %c288 = arith.constant 288 : index
    %c0_79 = arith.constant 0 : index
    %221 = vector.load %arg3[%c288, %c0_79] : memref<320x192xf32, #tpu.memory_space<vmem>>, vector<32x8xf32>
    %cst_80 = arith.constant dense<0.000000e+00> : vector<8x8xf32>
    %222 = tpu.matmul %220, %221, %cst_80 {dimension_numbers = #tpu.dot_dimension_numbers<[1], [0], [0], [1], [0, 0, 1, 1], [], []>} : vector<8x32xf32>, vector<32x8xf32>, vector<8x8xf32> -> vector<8x8xf32>
    %c7 = arith.constant 7 : index
    %c0_81 = arith.constant 0 : index
    %223 = vector.load %arg4[%c7, %c0_81] : memref<8x192xf32, #tpu.memory_space<vmem>>, vector<1x8xf32>
    %224 = vector.broadcast %223 : vector<1x8xf32> to vector<8x8xf32>
    %225 = arith.addf %222, %224 : vector<8x8xf32>
    %c0_82 = arith.constant 0 : index
    %c0_83 = arith.constant 0 : index
    %226 = vector.load %arg5[%c0_82, %c0_83] : memref<8x8xf32, #tpu.memory_space<vmem>>, vector<8x8xf32>
    tpu.vector_store %arg5[%c0_82, %c0_83], %225 {strides = array<i32>} : memref<8x8xf32, #tpu.memory_space<vmem>>, vector<8x8xf32>,
    return
  }
}

</mosaic_0001>

<bundles_post_ra>
// kernel: tpu_custom_call.1
= control target key start
LH: loop header
LB: loop body
LE: loop exit
PB: predicated region body
PF: predicated region fallthrough
CT: control target
= control target key end

     0   :  { %v1656_v2 = vmov 0.0|0.0   ;;  %vm1657_vm0 = vmmov 0   ;;  %v1658_v4 = vmov 0.0   ;;  %s2091_s0 = inlined_call_operand.vmem [shape: f32[8,16], index: 0, kind: input, shape index: {}]   ;;  %s2092_s1 = inlined_call_operand.vmem [shape: f32[5,8,8], index: 1, kind: input, shape index: {}]   ;;  %s2093_s2 = inlined_call_operand.vmem [shape: f32[128,128], index: 2, kind: input, shape index: {}]   ;;  %s2094_s3 = inlined_call_operand.vmem [shape: f32[320,192], index: 3, kind: input, shape index: {}]   ;;  %s2095_s4 = inlined_call_operand.vmem [shape: f32[8,192], index: 4, kind: input, shape index: {}]   ;;  %s2096_s5 = inlined_call_operand.hbm [shape: f32[8,8], index: 5, kind: output, shape index: {}]  }
   0x1   :  { %v33_v0 = vld [vmem:[%s2093_s2] sm:$0xff]  ;;  %v34_v1 = vld [vmem:[%s2093_s2 + $0x8] sm:$0xff]  ;;  %1516 = vmatprep.subr.bf16.mxu0 %v1656_v2  ;;  %1376 = vmatprep.mubr.msk.f32.mxu0 %vm1657_vm0, %v1658_v4  ;;  %v110_v5 = vld [vmem:[%s2093_s2 + $0x30] sm:$0xff] }
   0x2   :  { %v1517_v3 = vpack.c.bf16 %v34_v1, %v33_v0  ;;  %v111_v6 = vld [vmem:[%s2093_s2 + $0x38] sm:$0xff]  ;;  %1519 = vmatprep.subr.bf16.mxu1 %v1656_v2  ;;  %1387 = vmatprep.mubr.msk.f32.mxu1 %vm1657_vm0, %v1658_v4 }
   0x3   :  { %v1520_v7 = vpack.c.bf16 %v111_v6, %v110_v5 }
   0x4   :  { %10 = vsyncpa [#allocation3], 0  ;;  %1518 = vmatpush3.bf16.msra.mxu0 %v1517_v3  ;;  %v21_v8 = vld [vmem:[%s2091_s0] sm:$0xff]  ;;  %vm36_vm1 = vcmask 130048   ;;  %v113_v10 = vld [vmem:[%s2093_s2 + $0x48] sm:$0xff]  ;;  %v1659_v12 = vmov 1  }
   0x5   :  { %1521 = vmatpush3.bf16.msra.mxu1 %v1520_v7  ;;  %1390 = vmatprep.subr.mxu0 %v1658_v4  ;;  %v112_v9 = vld [vmem:[%s2093_s2 + $0x40] sm:$0xff]  ;;  %v1660_v13 = vmov 0   ;;  %vm114_vm2 = vcmask 261120   ;;  %s1661_s8 = smov 96   ;;  %v1662_v21 = vmov 2   ;;  %v1663_v22 = vmov 3  }
   0x6   :  { %1522 = vmatprep.subr.bf16.mxu1 %v1656_v2  ;;  %v1523_v11 = vpack.c.bf16 %v113_v10, %v112_v9  ;;  %1612 = vset.pattern.permute.xlu1 %v1659_v12  ;;  %v35_v14 = vld [vmem:[%s2095_s4] ss:$0 sm:$0xff]  ;;  %v1759_v29 = vld [vmem:[%s2092_s1 + $0x8] sm:$0xff]  ;;  %v1764_v31 = vld [vmem:[%s2092_s1 + $0x10] sm:$0xff]  ;;  %v1664_v42 = vmov -1e+30  }
   0x7   :  { %1377 = vmatmul.mubr.msk.f32.vlgmr.msra.gmra.mrb[0].mxu0 %vm36_vm1, %v21_v8  ;;  %1611 = vset.pattern.permute.xlu0 %v1660_v13  ;;  %v1753_v25 = vld [vmem:[%s2092_s1] sm:$0xff]  ;;  %v1771_v36 = vld [vmem:[%s2092_s1 + $0x18] sm:$0xff]  ;;  %vm288_vm4 = vcmask 64512   ;;  %s1665_s19 = smov 64   ;;  %v426_v3 = vld [vmem:[%s2093_s2 + $0x10] sm:$0xff]  ;;  %vm940_vm5 = vcmask 523264  }
   0x8   :  { %1392 = vmatprep.mubr.msk.f32.mxu0 %vm1657_vm0, %v1658_v4  ;;  %v1776_v37 = vld [vmem:[%s2092_s1 + $0x20] sm:$0xff]  ;;  %s1666_s1 = smov 32   ;;  %v427_v5 = vld [vmem:[%s2093_s2 + $0x18] sm:$0xff]  ;;  %v429_v8 = vld [vmem:[%s2093_s2 + $0x28] sm:$0xff]  ;;  %s1667_s21 = smov [#allocation2]  }
   0x9   :  { %1524 = vmatpush3.bf16.msra.mxu1 %v1523_v11  ;;  %vm31_vm3 = vcmp.gt.f32.partialorder %v1776_v37, 0.0  ;;  %v1526_v6 = vpack.c.bf16 %v427_v5, %v426_v3  ;;  %v428_v7 = vld [vmem:[%s2093_s2 + $0x20] sm:$0xff]  ;;  %v504_v10 = vld [vmem:[%s2093_s2 + $0x50] sm:$0xff]  ;;  %v505_v11 = vld [vmem:[%s2093_s2 + $0x58] sm:$0xff] }
   0xa   :  { %1525 = vmatprep.subr.bf16.mxu1 %v1656_v2  ;;  %v1780_v43 = vsel %vm31_vm3, 0.0, %v1664_v42  ;;  %v1529_v9 = vpack.c.bf16 %v429_v8, %v428_v7  ;;  %v1532_v13 = vpack.c.bf16 %v505_v11, %v504_v10  ;;  %v506_v42 = vld [vmem:[%s2093_s2 + $0x60] sm:$0xff] }
  0xda   :  { %v106_v15 = vpop.f32.mrb[0].mxu0 }
  0xdb   :  { %v1734_v16 = vadd.f32 %v106_v15, %v35_v14  ;;  %v1378_v17 = vpop.f32.mrb[1].mxu0 }
  0xdd   :  { %194 = vrot.lane.b32.xlu0 %v1734_v16, %s1661_s8  ;;  %1388 = vmatmul.mubr.msk.f32.vlgmr.msra.gmra.mrb[0].mxu1 %vm114_vm2, %v1734_v16 }
  0xde   :  { %1408 = vmatprep.mubr.msk.f32.mxu1 %vm1657_vm0, %v1658_v4  ;;  %1527 = vmatpush3.bf16.msra.mxu1 %v1526_v6 }
  0xdf   :  { %1528 = vmatprep.subr.bf16.mxu1 %v1656_v2 }
  0xe2   :  { %1530 = vmatpush3.bf16.msra.mxu1 %v1529_v9 }
  0xe3   :  { %1422 = vmatprep.subr.mxu1 %v1658_v4 }
 0x14f   :  { %v195_v18 = vpop.permute.xlu0 %194 }
 0x150   :  { %1391 = vmatpush3.xpose.msk.msra.mxu0 %vm114_vm2, %v195_v18  ;;  %v1288_v18 = vld [vmem:[%s2093_s2 + $0x71] ss:$0 sm:$0xff] }
 0x151   :  { %1395 = vmatprep.subr.mxu0 %v1658_v4 }
 0x153   :  { %1393 = vmatmul.mubr.msk.f32.vlgmr.msra.gmra.mrb[2].mxu0 %vm114_vm2, %v1734_v16 }
 0x154   :  { %1397 = vmatprep.mubr.msk.f32.mxu0 %vm1657_vm0, %v1658_v4 }
 0x1b0   :  { %v184_v19 = vpop.f32.mrb[0].mxu1 }
 0x1b1   :  { %269 = vperm.xlu1 %1612, %v184_v19   ;;  %190 = vperm.xlu0 %1611, %v184_v19   ;;  %v1389_v20 = vpop.f32.mrb[1].mxu1 }
 0x1b2   :  { %v1289_v20 = vld [vmem:[%s2093_s2 + $0x72] ss:$0 sm:$0xff] }
 0x1b5   :  { %1613 = vset.pattern.permute.xlu1 %v1662_v21 }
 0x1b6   :  { %275 = vperm.xlu1 %1613, %v184_v19  }
 0x1ba   :  { %1614 = vset.pattern.permute.xlu1 %v1663_v22 }
 0x1bb   :  { %281 = vperm.xlu1 %1614, %v184_v19  }
 0x226   :  { %v264_v23 = vpop.f32.mrb[2].mxu0 }
 0x227   :  { %v1394_v24 = vpop.f32.mrb[3].mxu0 }
 0x230   :  { %v270_v26 = vpop.permute.xlu1 %269  ;;  %v191_v27 = vpop.permute.xlu0 %190 }
 0x231   :  { %v193_v28 = vmul.f32 %v191_v27, %v1753_v25  ;;  %v272_v32 = vmul.f32 %v1759_v29, %v270_v26 }
 0x233   :  { %v265_v30 = vadd.f32 %v264_v23, %v193_v28  ;;  %v1290_v28 = vld [vmem:[%s2093_s2 + $0x73] ss:$0 sm:$0xff] }
 0x235   :  { %v276_v33 = vpop.permute.xlu1 %275  ;;  %v273_v34 = vadd.f32 %v272_v32, %v265_v30 }
 0x236   :  { %v278_v35 = vmul.f32 %v1764_v31, %v276_v33 }
 0x238   :  { %v279_v39 = vadd.f32 %v278_v35, %v273_v34 }
 0x23a   :  { %v282_v38 = vpop.permute.xlu1 %281 }
 0x23b   :  { %v284_v40 = vmul.f32 %v1771_v36, %v282_v38 }
 0x23d   :  { %v285_v41 = vadd.f32 %v284_v40, %v279_v39 }
 0x23f   :  { %v286_v44 = vmul.f32 0.17677669, %v285_v41 }
 0x241   :  { %v287_v45 = vadd.f32 %v286_v44, %v1780_v43  ;;  %v507_v44 = vld [vmem:[%s2093_s2 + $0x68] sm:$0xff] }
 0x243   :  { %v289_v46 = vsel %vm288_vm4, %v287_v45, -inf }
 0x244   :  { %290 = vmax.xlane.f32.xlu0 %v289_v46  ;;  %v430_v46 = vld [vmem:[%s2095_s4 + $0x1] ss:$0 sm:$0xff] }
 0x25a   :  { %312 = vrot.lane.b32.xlu0 %v1734_v16, %s1665_s19 }
 0x2d1   :  { %v291_v47 = vpop.xlane.xlu0 %290 }
 0x2d2   :  { %v292_v48 = vsub.f32 %v287_v45, %v291_v47  ;;  %v1535_v45 = vpack.c.bf16 %v507_v44, %v506_v42  ;;  %v1297_v42 = vld [vmem:[%s2093_s2 + $0x79] ss:$0 sm:$0xff] }
 0x2d4   :  { %v293_v49 = vmul.f32 1.442695, %v292_v48 }
 0x2d5   :  { %v313_v50 = vpop.permute.xlu0 %312 }
 0x2d6   :  { %1618 = vpow2.f32 %v293_v49  ;;  %1396 = vmatpush3.msra.mxu0 %v313_v50 }
 0x2d7   :  { %1531 = vmatprep.subr.bf16.mxu0 %v1656_v2 }
 0x2e0   :  { %v1619_v51 = vpop.eup %1618 }
 0x2e1   :  { %v295_v52 = vmul.f32 %v1619_v51, %v1776_v37 }
 0x2e3   :  { %v296_v53 = vsel %vm288_vm4, %v295_v52, 0.0 }
 0x2e4   :  { %297 = vadd.xlane.f32.xlu1 %v296_v53 }
 0x371   :  { %v298_v54 = vpop.xlane.xlu1 %297 }
 0x372   :  { %v299_v55 = vmax.f32 %v298_v54, 1e-20 }
 0x374   :  { %1620 = vrcp.f32 %v299_v55 }
 0x37e   :  { %v1621_v56 = vpop.eup %1620 }
 0x37f   :  { %v301_v57 = vmul.f32 %v1621_v56, %v295_v52 }
 0x381   :  { %1398 = vmatmul.mubr.msk.f32.vlgmr.msra.gmra.mrb[4].mxu0 %vm288_vm4, %v301_v57  ;;  %v302_v58 = vmul.f32 %v301_v57, %v1753_v25  ;;  %v388_v60 = vmul.f32 %v1759_v29, %v301_v57  ;;  %v399_v62 = vmul.f32 %v1764_v31, %v301_v57  ;;  %v410_v0 = vmul.f32 %v1771_v36, %v301_v57 }
 0x382   :  { %1419 = vmatprep.mubr.msk.f32.mxu0 %vm1657_vm0, %v1658_v4  ;;  %1533 = vmatpush3.bf16.msra.mxu0 %v1532_v13 }
 0x383   :  { %v303_v59 = vsel %vm288_vm4, %v302_v58, 0.0  ;;  %v389_v61 = vsel %vm288_vm4, %v388_v60, 0.0  ;;  %v400_v63 = vsel %vm288_vm4, %v399_v62, 0.0  ;;  %v411_v1 = vsel %vm288_vm4, %v410_v0, 0.0  ;;  %1534 = vmatprep.subr.bf16.mxu0 %v1656_v2 }
 0x384   :  { %304 = vadd.xlane.f32.xlu1 %v303_v59 }
 0x386   :  { %1536 = vmatpush3.bf16.msra.mxu0 %v1535_v45  ;;  %v1298_v45 = vld [vmem:[%s2093_s2 + $0x7a] ss:$0 sm:$0xff] }
 0x387   :  { %1427 = vmatprep.subr.mxu0 %v1658_v4 }
 0x388   :  { %390 = vadd.xlane.f32.xlu1 %v389_v61 }
 0x38c   :  { %401 = vadd.xlane.f32.xlu1 %v400_v63 }
 0x390   :  { %412 = vadd.xlane.f32.xlu1 %v411_v1 }
 0x3a1   :  { %421 = vrot.lane.b32.xlu1 %v1734_v16, %s1666_s1  ;;  %v1286_v16 = vld [vmem:[%s2093_s2 + $0x70] ss:$0 sm:$0xff] }
 0x411   :  { %v305_v14 = vpop.xlane.xlu1 %304 }
 0x412   :  { %v311_v19 = vmul.f32 %v1286_v16, %v305_v14 }
 0x415   :  { %v391_v15 = vpop.xlane.xlu1 %390 }
 0x416   :  { %v397_v24 = vmul.f32 %v1288_v18, %v391_v15 }
 0x419   :  { %v402_v17 = vpop.xlane.xlu1 %401 }
 0x41a   :  { %v408_v32 = vmul.f32 %v1289_v20, %v402_v17 }
 0x41d   :  { %v413_v30 = vpop.xlane.xlu1 %412 }
 0x41e   :  { %v419_v34 = vmul.f32 %v1290_v28, %v413_v30  ;;  %v822_v28 = vld [vmem:[%s2094_s3 + $0x28] sm:$0xff]  ;;  %v824_v30 = vld [vmem:[%s2094_s3 + $0x38] sm:$0xff] }
 0x421   :  { %v422_v39 = vpop.permute.xlu1 %421 }
 0x454   :  { %v384_v23 = vpop.f32.mrb[4].mxu0 }
 0x455   :  { %v385_v26 = vadd.f32 %v384_v23, %v311_v19  ;;  %v1399_v27 = vpop.f32.mrb[5].mxu0 }
 0x457   :  { %v398_v33 = vadd.f32 %v397_v24, %v385_v26  ;;  %v819_v26 = vld [vmem:[%s2094_s3 + $0x10] sm:$0xff] }
 0x459   :  { %v409_v35 = vadd.f32 %v408_v32, %v398_v33  ;;  %v1541_v32 = vpack.c.bf16 %v824_v30, %v822_v28  ;;  %v821_v33 = vld [vmem:[%s2094_s3 + $0x20] sm:$0xff] }
 0x45a   :  { %v1018_v30 = vld [vmem:[%s2094_s3 + $0x100] sm:$0xff] }
 0x45b   :  { %v420_v38 = vadd.f32 %v419_v34, %v409_v35  ;;  %v823_v34 = vld [vmem:[%s2094_s3 + $0x30] sm:$0xff] }
 0x45c   :  { %v1543_v35 = vpack.c.bf16 %v823_v34, %v821_v33  ;;  %v1020_v34 = vld [vmem:[%s2094_s3 + $0x120] sm:$0xff] }
 0x45d   :  { %v424_v40 = vadd.f32 %v422_v39, %v420_v38 }
 0x45f   :  { %v425_v41 = vmax.f32 %v424_v40, 0.0  ;;  %v1295_v40 = vld [vmem:[%s2093_s2 + $0x78] ss:$0 sm:$0xff] }
 0x461   :  { %1409 = vmatmul.mubr.msk.f32.vlgmr.msra.gmra.mrb[2].mxu1 %vm114_vm2, %v425_v41 }
 0x462   :  { %1424 = vmatprep.mubr.msk.f32.mxu1 %vm1657_vm0, %v1658_v4 }
 0x534   :  { %v500_v47 = vpop.f32.mrb[2].mxu1 }
 0x535   :  { %v1848_v48 = vadd.f32 %v500_v47, %v430_v46  ;;  %v1410_v49 = vpop.f32.mrb[3].mxu1 }
 0x537   :  { %587 = vrot.lane.b32.xlu0 %v1848_v48, %s1661_s8  ;;  %1420 = vmatmul.mubr.msk.f32.vlgmr.msra.gmra.mrb[6].mxu0 %vm114_vm2, %v1848_v48 }
 0x538   :  { %1429 = vmatprep.mubr.msk.f32.mxu0 %vm1657_vm0, %v1658_v4 }
 0x5a9   :  { %v588_v50 = vpop.permute.xlu0 %587 }
 0x5aa   :  { %1423 = vmatpush3.xpose.msk.msra.mxu1 %vm114_vm2, %v588_v50  ;;  %v1299_v50 = vld [vmem:[%s2093_s2 + $0x7b] ss:$0 sm:$0xff]  ;;  %s1270_s2 = sshll.u32 %s1667_s21, 4  ;;  %s1271_s2 = int_to_ptr.vmem [resolvable:$true] %s1270_s2 }
 0x5ab   :  { %p1637_p1 = scmp.lt.s32.totalorder %s1271_s2, %s1271_s2 }
 0x5ad   :  { %1425 = vmatmul.mubr.msk.f32.vlgmr.msra.gmra.mrb[4].mxu1 %vm114_vm2, %v1848_v48 }
 0x5ae   :  { %905 = vmatprep.mubr.f32.mxu1 %v1658_v4 }
 0x60a   :  { %v577_v51 = vpop.f32.mrb[6].mxu0 }
 0x60b   :  { %674 = vperm.xlu1 %1614, %v577_v51   ;;  %583 = vperm.xlu0 %1611, %v577_v51   ;;  %v1421_v52 = vpop.f32.mrb[7].mxu0 }
 0x60f   :  { %1615 = vset.pattern.permute.xlu0 %v1659_v12 }
 0x610   :  { %662 = vperm.xlu0 %1615, %v577_v51  }
 0x614   :  { %1616 = vset.pattern.permute.xlu0 %v1662_v21 }
 0x615   :  { %668 = vperm.xlu0 %1616, %v577_v51  }
 0x619   :  { %1617 = vset.pattern.permute.xlu0 %v1663_v22 }
 0x680   :  { %v657_v53 = vpop.f32.mrb[4].mxu1 }
 0x681   :  { %v1426_v54 = vpop.f32.mrb[5].mxu1 }
 0x68a   :  { %v584_v55 = vpop.permute.xlu0 %583  ;;  %v675_v60 = vpop.permute.xlu1 %674 }
 0x68b   :  { %v586_v56 = vmul.f32 %v584_v55, %v1753_v25  ;;  %v677_v63 = vmul.f32 %v1771_v36, %v675_v60 }
 0x68d   :  { %v658_v59 = vadd.f32 %v657_v53, %v586_v56 }
 0x68f   :  { %v663_v57 = vpop.permute.xlu0 %662 }
 0x690   :  { %v665_v58 = vmul.f32 %v1759_v29, %v663_v57 }
 0x692   :  { %v666_v62 = vadd.f32 %v665_v58, %v658_v59  ;;  %v828_v59 = vlaneseq }
 0x694   :  { %v669_v61 = vpop.permute.xlu0 %668  ;;  %v829_v60 = vshrl.u32 %v828_v59, 7 }
 0x695   :  { %v671_v12 = vmul.f32 %v1764_v31, %v669_v61 }
 0x696   :  { %v830_v61 = vsub.s32 0, %v829_v60 }
 0x697   :  { %v672_v21 = vadd.f32 %v671_v12, %v666_v62  ;;  %v1300_v62 = vld [vmem:[%s2095_s4 + $0x2] ss:$8 sm:$0x3] }
 0x698   :  { %v831_v12 = vrot.slane %v1300_v62, %v830_v61 }
 0x699   :  { %v678_v0 = vadd.f32 %v677_v63, %v672_v21 }
 0x69b   :  { %v679_v1 = vmul.f32 0.17677669, %v678_v0 }
 0x69d   :  { %v680_v22 = vadd.f32 %v679_v1, %v1780_v43 }
 0x69f   :  { %v681_v3 = vsel %vm288_vm4, %v680_v22, -inf }
 0x6a0   :  { %682 = vmax.xlane.f32.xlu1 %v681_v3 }
 0x72d   :  { %v683_v5 = vpop.xlane.xlu1 %682 }
 0x72e   :  { %v684_v6 = vsub.f32 %v680_v22, %v683_v5  ;;  %v834_v5 = vsub.s32 1, %v829_v60  ;;  %v1105_v60 = vld [vmem:[%s2094_s3 + $0x1f0] sm:$0xff] }
 0x730   :  { %v685_v7 = vmul.f32 1.442695, %v684_v6  ;;  %v835_v6 = vrot.slane %v1300_v62, %v834_v5  ;;  %v1106_v62 = vld [vmem:[%s2094_s3 + $0x200] sm:$0xff] }
 0x731   :  { %v1108_v5 = vld [vmem:[%s2094_s3 + $0x220] sm:$0xff] }
 0x732   :  { %1622 = vpow2.f32 %v685_v7  ;;  %v918_v7 = vld [vmem:[%s2095_s4 + $0x3] ss:$0 sm:$0xff] }
 0x73c   :  { %v1623_v8 = vpop.eup %1622 }
 0x73d   :  { %v687_v9 = vmul.f32 %v1623_v8, %v1776_v37 }
 0x73f   :  { %v688_v10 = vsel %vm288_vm4, %v687_v9, 0.0 }
 0x740   :  { %689 = vadd.xlane.f32.xlu0 %v688_v10 }
 0x756   :  { %704 = vrot.lane.b32.xlu0 %v1848_v48, %s1665_s19 }
 0x7cd   :  { %v690_v11 = vpop.xlane.xlu0 %689 }
 0x7ce   :  { %v691_v13 = vmax.f32 %v690_v11, 1e-20 }
 0x7d0   :  { %1624 = vrcp.f32 %v691_v13  ;;  %v928_v13 = vld [vmem:[%s2094_s3 + $0x40] sm:$0xff] }
 0x7d1   :  { %v705_v43 = vpop.permute.xlu0 %704 }
 0x7d2   :  { %1428 = vmatpush3.msra.mxu0 %v705_v43  ;;  %v929_v43 = vld [vmem:[%s2094_s3 + $0x50] sm:$0xff] }
 0x7d3   :  { %1545 = vmatprep.subr.bf16.mxu0 %v1656_v2 }
 0x7da   :  { %v1625_v14 = vpop.eup %1624 }
 0x7db   :  { %v693_v15 = vmul.f32 %v1625_v14, %v687_v9  ;;  %v930_v14 = vld [vmem:[%s2094_s3 + $0x60] sm:$0xff] }
 0x7dd   :  { %1430 = vmatmul.mubr.msk.f32.vlgmr.msra.gmra.mrb[8].mxu0 %vm288_vm4, %v693_v15  ;;  %v694_v16 = vmul.f32 %v693_v15, %v1753_v25  ;;  %v780_v17 = vmul.f32 %v1759_v29, %v693_v15  ;;  %v791_v19 = vmul.f32 %v1764_v31, %v693_v15  ;;  %v802_v23 = vmul.f32 %v1771_v36, %v693_v15  ;;  %v818_v29 = vld [vmem:[%s2094_s3 + $0x8] sm:$0xff]  ;;  %v820_v31 = vld [vmem:[%s2094_s3 + $0x18] sm:$0xff]  ;;  %v817_v36 = vld [vmem:[%s2094_s3] sm:$0xff] }
 0x7de   :  { %1448 = vmatprep.mubr.msk.f32.mxu0 %vm1657_vm0, %v1658_v4  ;;  %v1537_v24 = vpack.c.bf16 %v820_v31, %v818_v29  ;;  %v1539_v27 = vpack.c.bf16 %v819_v26, %v817_v36  ;;  %v1546_v15 = vpack.c.bf16 %v929_v43, %v928_v13  ;;  %v1014_v31 = vld [vmem:[%s2094_s3 + $0xc0] sm:$0xff] }
 0x7df   :  { %v695_v37 = vsel %vm288_vm4, %v694_v16, 0.0  ;;  %v781_v18 = vsel %vm288_vm4, %v780_v17, 0.0  ;;  %v792_v20 = vsel %vm288_vm4, %v791_v19, 0.0  ;;  %v803_v25 = vsel %vm288_vm4, %v802_v23, 0.0  ;;  %v931_v16 = vld [vmem:[%s2094_s3 + $0x70] sm:$0xff]  ;;  %v932_v17 = vld [vmem:[%s2094_s3 + $0x80] sm:$0xff] }
 0x7e0   :  { %696 = vadd.xlane.f32.xlu1 %v695_v37  ;;  %1538 = vmatprep.subr.bf16.mxu1 %v1537_v24  ;;  %v1549_v37 = vpack.c.bf16 %v931_v16, %v930_v14  ;;  %v935_v23 = vld [vmem:[%s2094_s3 + $0xb0] sm:$0xff]  ;;  %v1016_v36 = vld [vmem:[%s2094_s3 + $0xe0] sm:$0xff] }
 0x7e1   :  { %1540 = vmatpush1.bf16.msra.mxu1 %v1539_v27  ;;  %1547 = vmatpush3.bf16.msra.mxu0 %v1546_v15  ;;  %v1015_v24 = vld [vmem:[%s2094_s3 + $0xd0] sm:$0xff]  ;;  %v1187_v16 = vld [vmem:[%s2094_s3 + $0x260] sm:$0xff] }
 0x7e2   :  { %1542 = vmatprep.subr.bf16.mxu1 %v1541_v32  ;;  %1548 = vmatprep.subr.bf16.mxu0 %v1656_v2  ;;  %v1558_v26 = vpack.c.bf16 %v1015_v24, %v1014_v31  ;;  %v1017_v27 = vld [vmem:[%s2094_s3 + $0xf0] sm:$0xff] }
 0x7e3   :  { %v1561_v28 = vpack.c.bf16 %v1017_v27, %v1016_v36  ;;  %v1019_v32 = vld [vmem:[%s2094_s3 + $0x110] sm:$0xff] }
 0x7e4   :  { %782 = vadd.xlane.f32.xlu1 %v781_v18  ;;  %v933_v18 = vld [vmem:[%s2094_s3 + $0x90] sm:$0xff]  ;;  %v1564_v33 = vpack.c.bf16 %v1019_v32, %v1018_v30 }
 0x7e5   :  { %1544 = vmatpush1.bf16.msra.mxu1 %v1543_v35  ;;  %1550 = vmatpush3.bf16.msra.mxu0 %v1549_v37  ;;  %v1552_v19 = vpack.c.bf16 %v933_v18, %v932_v17  ;;  %v1021_v35 = vld [vmem:[%s2094_s3 + $0x130] sm:$0xff]  ;;  %v1110_v18 = vld [vmem:[%s2095_s4 + $0x6] ss:$0 sm:$0xff] }
 0x7e6   :  { %1557 = vmatprep.subr.bf16.mxu1 %v1656_v2  ;;  %1551 = vmatprep.subr.bf16.mxu0 %v1656_v2  ;;  %v1188_v37 = vld [vmem:[%s2094_s3 + $0x270] sm:$0xff] }
 0x7e7   :  { %v1597_v17 = vpack.c.bf16 %v1188_v37, %v1187_v16 }
 0x7e8   :  { %793 = vadd.xlane.f32.xlu1 %v792_v20  ;;  %v934_v20 = vld [vmem:[%s2094_s3 + $0xa0] sm:$0xff] }
 0x7e9   :  { %1553 = vmatpush3.bf16.msra.mxu0 %v1552_v19  ;;  %v1555_v29 = vpack.c.bf16 %v935_v23, %v934_v20 }
 0x7ea   :  { %1554 = vmatprep.subr.bf16.mxu0 %v1656_v2 }
 0x7ec   :  { %804 = vadd.xlane.f32.xlu1 %v803_v25 }
 0x7ed   :  { %1556 = vmatpush3.bf16.msra.mxu0 %v1555_v29 }
 0x7ee   :  { %1581 = vmatprep.subr.bf16.mxu0 %v1656_v2 }
 0x7fd   :  { %813 = vrot.lane.b32.xlu1 %v1848_v48, %s1666_s1 }
 0x86d   :  { %v697_v38 = vpop.xlane.xlu1 %696 }
 0x86e   :  { %v703_v44 = vmul.f32 %v1295_v40, %v697_v38 }
 0x871   :  { %v783_v39 = vpop.xlane.xlu1 %782 }
 0x872   :  { %v789_v47 = vmul.f32 %v1297_v42, %v783_v39  ;;  %v1022_v42 = vld [vmem:[%s2094_s3 + $0x140] sm:$0xff] }
 0x875   :  { %v794_v41 = vpop.xlane.xlu1 %793 }
 0x876   :  { %v800_v52 = vmul.f32 %v1298_v45, %v794_v41  ;;  %v1567_v41 = vpack.c.bf16 %v1021_v35, %v1020_v34 }
 0x879   :  { %v805_v51 = vpop.xlane.xlu1 %804 }
 0x87a   :  { %v811_v54 = vmul.f32 %v1299_v50, %v805_v51  ;;  %v1027_v50 = vld [vmem:[%s2094_s3 + $0x190] sm:$0xff] }
 0x87d   :  { %v814_v57 = vpop.permute.xlu1 %813 }
 0x8b0   :  { %v776_v46 = vpop.f32.mrb[8].mxu0 }
 0x8b1   :  { %v777_v48 = vadd.f32 %v776_v46, %v703_v44  ;;  %v1431_v49 = vpop.f32.mrb[9].mxu0  ;;  %v1023_v44 = vld [vmem:[%s2094_s3 + $0x150] sm:$0xff]  ;;  %v1024_v46 = vld [vmem:[%s2094_s3 + $0x160] sm:$0xff] }
 0x8b2   :  { %v1570_v45 = vpack.c.bf16 %v1023_v44, %v1022_v42  ;;  %v1026_v49 = vld [vmem:[%s2094_s3 + $0x180] sm:$0xff] }
 0x8b3   :  { %v790_v53 = vadd.f32 %v789_v47, %v777_v48  ;;  %v1025_v47 = vld [vmem:[%s2094_s3 + $0x170] sm:$0xff]  ;;  %v1576_v51 = vpack.c.bf16 %v1027_v50, %v1026_v49 }
 0x8b4   :  { %v1573_v48 = vpack.c.bf16 %v1025_v47, %v1024_v46 }
 0x8b5   :  { %v801_v55 = vadd.f32 %v800_v52, %v790_v53  ;;  %v1028_v53 = vld [vmem:[%s2094_s3 + $0x1a0] sm:$0xff] }
 0x8b7   :  { %v812_v56 = vadd.f32 %v811_v54, %v801_v55  ;;  %v1029_v54 = vld [vmem:[%s2094_s3 + $0x1b0] sm:$0xff] }
 0x8b8   :  { %v1579_v55 = vpack.c.bf16 %v1029_v54, %v1028_v53 }
 0x8b9   :  { %v816_v58 = vadd.f32 %v814_v57, %v812_v56  ;;  %v1102_v56 = vld [vmem:[%s2094_s3 + $0x1c0] sm:$0xff]  ;;  %v1103_v57 = vld [vmem:[%s2094_s3 + $0x1d0] sm:$0xff] }
 0x8ba   :  { %v1582_v59 = vpack.c.bf16 %v1103_v57, %v1102_v56 }
 0x8bb   :  { %1301 = vmatmul.mubr.msk.f32.vlgmr.msra.gmra.mrb[6].mxu1 %vm114_vm2, %v816_v58  ;;  %v1104_v58 = vld [vmem:[%s2094_s3 + $0x1e0] sm:$0xff] }
 0x8bc   :  { %1483 = vmatprep.mubr.msk.f32.mxu1 %vm1657_vm0, %v1658_v4  ;;  %1559 = vmatpush3.bf16.msra.mxu1 %v1558_v26  ;;  %v1585_v61 = vpack.c.bf16 %v1105_v60, %v1104_v58 }
 0x8bd   :  { %1560 = vmatprep.subr.bf16.mxu1 %v1656_v2 }
 0x8c0   :  { %1562 = vmatpush3.bf16.msra.mxu1 %v1561_v28 }
 0x8c1   :  { %1563 = vmatprep.subr.bf16.mxu1 %v1656_v2 }
 0x8c4   :  { %1565 = vmatpush3.bf16.msra.mxu1 %v1564_v33 }
 0x8c5   :  { %1566 = vmatprep.subr.bf16.mxu1 %v1656_v2 }
 0x8c8   :  { %1568 = vmatpush3.bf16.msra.mxu1 %v1567_v41 }
 0x8c9   :  { %1569 = vmatprep.subr.bf16.mxu1 %v1656_v2 }
 0x8cc   :  { %1571 = vmatpush3.bf16.msra.mxu1 %v1570_v45 }
 0x8cd   :  { %1572 = vmatprep.subr.bf16.mxu1 %v1656_v2 }
 0x8d0   :  { %1574 = vmatpush3.bf16.msra.mxu1 %v1573_v48 }
 0x8d1   :  { %1575 = vmatprep.subr.bf16.mxu1 %v1656_v2 }
 0x8d4   :  { %1577 = vmatpush3.bf16.msra.mxu1 %v1576_v51 }
 0x8d5   :  { %1578 = vmatprep.subr.bf16.mxu1 %v1656_v2 }
 0x8d8   :  { %1580 = vmatpush3.bf16.msra.mxu1 %v1579_v55 }
 0x98e   :  { %v907_v63 = vpop.f32.mrb[6].mxu1 }
 0x98f   :  { %v908_v21 = vadd.f32 %v907_v63, %v831_v12  ;;  %v909_v0 = vpop.f32.mrb[7].mxu1  ;;  %v1107_v12 = vld [vmem:[%s2094_s3 + $0x210] sm:$0xff] }
 0x990   :  { %v910_v9 = vadd.f32 %v909_v0, %v835_v6  ;;  %v1588_v63 = vpack.c.bf16 %v1107_v12, %v1106_v62  ;;  %v1109_v6 = vld [vmem:[%s2094_s3 + $0x230] sm:$0xff] }
 0x991   :  { %v1302_v1 = vmul.f32 -1.442695, %v908_v21  ;;  %v936_v21 = vld [vmem:[%s2095_s4 + $0x4] ss:$0 sm:$0xff] }
 0x993   :  { %1626 = vpow2.f32 %v1302_v1 }
 0x99d   :  { %v1627_v22 = vpop.eup %1626 }
 0x99e   :  { %v915_v3 = vadd.f32 1.0, %v1627_v22 }
 0x9a0   :  { %1628 = vrcp.f32 %v915_v3 }
 0x9aa   :  { %v1629_v8 = vpop.eup %1628 }
 0x9ab   :  { %v919_v10 = vmul.f32 %v1629_v8, %v918_v7  ;;  %v922_v38 = vsub.f32 1.0, %v1629_v8  ;;  %v1591_v7 = vpack.c.bf16 %v1109_v6, %v1108_v5  ;;  %v1030_v8 = vld [vmem:[%s2095_s4 + $0x5] ss:$0 sm:$0xff] }
 0x9ad   :  { %v920_v11 = vadd.f32 %v919_v10, %v910_v9  ;;  %v1185_v9 = vld [vmem:[%s2094_s3 + $0x240] sm:$0xff]  ;;  %v1186_v10 = vld [vmem:[%s2094_s3 + $0x250] sm:$0xff]  ;;  %s1632_s3 = scalar_lea.vmem %s1271_s2, 128 }
 0x9ae   :  { %v1594_v14 = vpack.c.bf16 %v1186_v10, %v1185_v9  ;;  %p1633_p0 = scmp.ne.s32.totalorder %s1271_s2, %s1632_s3  ;;  %p1638_p2 = scmp.lt.s32.totalorder %s1632_s3, %s1632_s3 }
 0x9af   :  { %1630 = vtanh.f32 %v920_v11 }
 0x9b0   :  { %p1639_p3 = por %p1638_p2, %p1637_p1 }
 0x9b2   :  { %p1640_p4 = pnand %p1639_p3, %p1633_p0 }
 0x9b9   :  { %v1631_v25 = vpop.eup %1630 }
 0x9ba   :  { %924 = vrot.lane.b32.xlu0 %v1631_v25, %s1665_s19 }
 0xa2c   :  { %v925_v39 = vpop.permute.xlu0 %924 }
 0xa2d   :  { %v927_v40 = vmul.f32 %v925_v39, %v922_v38 }
 0xa2f   :  { %938 = vrot.lane.b32.xlu0 %v927_v40, %s1665_s19 }
 0xaa1   :  { %v939_v52 = vpop.permute.xlu0 %938 }
 0xaa2   :  { %1449 = vmatmul.mubr.msk.f32.vlgmr.msra.gmra.mrb[10].mxu0 %vm940_vm5, %v939_v52 }
 0xaa3   :  { %1502 = vmatprep.mubr.msk.f32.mxu0 %vm1657_vm0, %v1658_v4  ;;  %1583 = vmatpush3.bf16.msra.mxu0 %v1582_v59 }
 0xaa4   :  { %1584 = vmatprep.subr.bf16.mxu0 %v1656_v2 }
 0xaa7   :  { %1586 = vmatpush3.bf16.msra.mxu0 %v1585_v61 }
 0xaa8   :  { %1587 = vmatprep.subr.bf16.mxu0 %v1656_v2 }
 0xaab   :  { %1589 = vmatpush3.bf16.msra.mxu0 %v1588_v63 }
 0xaac   :  { %1590 = vmatprep.subr.bf16.mxu0 %v1656_v2 }
 0xaaf   :  { %1592 = vmatpush3.bf16.msra.mxu0 %v1591_v7 }
 0xab0   :  { %1593 = vmatprep.subr.bf16.mxu0 %v1656_v2 }
 0xb75   :  { %v1009_v0 = vpop.f32.mrb[10].mxu0 }
 0xb76   :  { %v1010_v1 = vadd.f32 %v1009_v0, %v936_v21  ;;  %v1450_v22 = vpop.f32.mrb[11].mxu0 }
 0xb78   :  { %v1013_v3 = vmax.f32 %v1010_v1, 0.0 }
 0xb7a   :  { %1484 = vmatmul.mubr.f32.vlgmr.msra.gmra.mrb[8].mxu1 %v1013_v3 }
 0xc4d   :  { %v1097_v11 = vpop.f32.mrb[8].mxu1 }
 0xc4e   :  { %v1098_v13 = vadd.f32 %v1097_v11, %v1030_v8  ;;  %v1485_v43 = vpop.f32.mrb[9].mxu1 }
 0xc50   :  { %v1101_v15 = vmax.f32 %v1098_v13, 0.0 }
 0xc52   :  { %1503 = vmatmul.mubr.msk.f32.vlgmr.msra.gmra.mrb[12].mxu0 %vm940_vm5, %v1101_v15 }
 0xc53   :  { %1595 = vmatpush3.bf16.msra.mxu0 %v1594_v14  ;;  %1513 = vmatprep.mubr.msk.f32.mxu0 %vm1657_vm0, %v1658_v4 }
 0xc54   :  { %1596 = vmatprep.subr.bf16.mxu0 %v1656_v2  ;;  %v1189_v2 = vld [vmem:[%s2095_s4 + $0x7] ss:$0 sm:$0xff] }
 0xc57   :  { %1598 = vmatpush3.bf16.msra.mxu0 %v1597_v17 }
 0xd25   :  { %v1180_v19 = vpop.f32.mrb[12].mxu0 }
 0xd26   :  { %v1181_v20 = vadd.f32 %v1180_v19, %v1110_v18  ;;  %v1504_v23 = vpop.f32.mrb[13].mxu0 }
 0xd28   :  { %v1184_v4 = vmax.f32 %v1181_v20, 0.0 }
 0xd2a   :  { %1514 = vmatmul.mubr.msk.f32.vlgmr.msra.gmra.mrb[14].mxu0 %vm114_vm2, %v1184_v4 }
 0xdfd   :  { %v1259_v25 = vpop.f32.mrb[14].mxu0 }
 0xdfe   :  { %v1260_v29 = vadd.f32 %v1259_v25, %v1189_v2  ;;  %v1515_v31 = vpop.f32.mrb[15].mxu0 }
 0xe00   :  { %1263 = vst.msk [vmem:[#allocation2] sm:$0xff] %vm288_vm4, %v1260_v29 }
 0xe01   :  { %1643 = shalt.err (!%p1640_p4)
}
 0xe02   :  { %s1644_s23 = scalar_lea.hbm %s2096_s5, 128 }
 0xe03   :  { %p1645_p5 = scmp.ne.s32.totalorder %s2096_s5, %s1644_s23  ;;  %p1648_p6 = scmp.lt.u32.totalorder %s1644_s23, %s2096_s5 }
 0xe05   :  { %p1650_p7 = pnand %p1648_p6, %p1645_p5 }
 0xe07   :  { %1653 = shalt.err (!%p1650_p7)
}
 0xe08   :  { %1273 = dma.vmem_to_hbm [thread:$0]  %s1271_s2, 128, %s2096_s5, [#allocation3]  }
 0xe09   :  { %1654 = dma.done.wait [#allocation3], 128  }
 0xe0a   :  { %1655 = vsyncadd [#allocation3], 4294967168 }
 0xe0b   :  { %1277 = vsyncpa [#allocation3], 1 }

</bundles_post_ra>
